<compile_context>
chip_gen: v7x
topology: tpu7x:2x2x1
jax: 0.10.0
libtpu: 0.0.40
codegen_flags: <defaults>
</compile_context>

<pallas_src>
import math
from functools import partial

import jax
import jax.numpy as jnp
from jax.experimental import pallas as pl
from jax.experimental.pallas import tpu as pltpu


def _round_up(v, m):
    return ((v + m - 1) // m) * m


def _padded_block_bytes(rows, cols, dtype):
    """VMEM footprint of a [rows, cols] block incl. (sublane, 128-lane) tiling."""
    item = jnp.dtype(dtype).itemsize
    sublane = {4: 8, 2: 16, 1: 32}.get(item, 8)
    return _round_up(max(rows, 1), sublane) * _round_up(max(cols, 1), 128) * item


def _banded_matmul_kernel(x_ref, w_ref, o_ref):
    """One sequence tile of the circular token conv as a single MXU matmul.

    x_ref: [tm, N*P]   bf16 lane-dense padded series for tm sequences
    w_ref: [N*P, N*D]  bf16 block-banded circulant conv weight (VMEM-resident)
    o_ref: [tm, N*D]   output dtype, lane-dense
    """
    o_ref[...] = jnp.dot(
        x_ref[...], w_ref[...], preferred_element_type=jnp.float32
    ).astype(o_ref.dtype)


def _pick_tm(M, np_cols, nd_cols, in_dtype, out_dtype, w_dtype,
             budget=10 * 1024 * 1024):
    """Largest multiple-of-8 sequence tile whose double-buffered, tiling-padded
    blocks (plus the VMEM-resident banded weight) fit the budget."""
    w_bytes = 2 * _padded_block_bytes(np_cols, nd_cols, w_dtype)

    def blocks_bytes(tm):
        return (2 * _padded_block_bytes(tm, np_cols, in_dtype)
                + 2 * _padded_block_bytes(tm, nd_cols, out_dtype)
                + w_bytes)

    tm = min(_round_up(M, 8), 512)
    while tm > 8 and blocks_bytes(tm) > budget:
        tm -= 8
    tm = max(tm, 8)
    # Keep >= 2 grid tiles whenever M allows so both v7x TensorCores get work
    # (the grid axis is marked "parallel").
    if M > 8:
        tm = min(tm, max(8, _round_up((M + 1) // 2, 8)))
    return tm, blocks_bytes(tm)


def _circular_conv_banded_pallas(x_series, w_banded, out_dtype, num_patches, d_model):
    """x_series: [M, N*P]; w_banded: [N*P, N*D] -> [M, N, D] (out_dtype)."""
    M, NP = x_series.shape
    ND = w_banded.shape[1]

    tm, need = _pick_tm(M, NP, ND, x_series.dtype, out_dtype, w_banded.dtype)
    Mp = _round_up(M, tm)
    if Mp != M:
        x_series = jnp.pad(x_series, ((0, Mp - M), (0, 0)))

    # Explicit scoped-VMEM limit sized from the padding-corrected block math
    # (with headroom); stays below every generation's physical VMEM.
    vmem_limit = int(min(48 * 1024 * 1024,
                         max(need + 4 * 1024 * 1024, 16 * 1024 * 1024)))

    out2d = pl.pallas_call(
        _banded_matmul_kernel,
        out_shape=jax.ShapeDtypeStruct((Mp, ND), out_dtype),
        grid_spec=pltpu.PrefetchScalarGridSpec(
            num_scalar_prefetch=0,
            grid=(Mp // tm,),
            in_specs=[
                pl.BlockSpec((tm, NP), lambda m: (m, 0)),
                # constant index_map: banded weight DMA'd once, stays resident.
                pl.BlockSpec((NP, ND), lambda m: (0, 0)),
            ],
            out_specs=pl.BlockSpec((tm, ND), lambda m: (m, 0)),
        ),
        compiler_params=pltpu.CompilerParams(
            dimension_semantics=("parallel",),
            vmem_limit_bytes=vmem_limit,
        ),
    )(x_series, w_banded)

    # [Mp, N*D] -> [M, N, D]: pure reshape of the minor dim (no transpose pass).
    return out2d[:M].reshape(M, num_patches, d_model)


def _build_banded_weight(conv_weight, num_patches, compute_dtype):
    """PyTorch Conv1d weight [D, P, 3] -> block-banded circulant [N*P, N*D].

    W[src*P + p, t*D + d] = sum_{k : (t + k - 1) mod N == src} w[d, p, k]
    so y[m, t, d] = sum_{src, p} x[m, src, p] * W[src*P+p, t*D+d] reproduces the
    circular cross-correlation of the reference Conv1d (taps k=0..2, padding 1).
    """
    D, P, K = conv_weight.shape
    N = num_patches
    w_taps = jnp.transpose(conv_weight, (2, 1, 0)).astype(jnp.float32)  # [3, P, D]
    w4 = jnp.zeros((N, P, N, D), jnp.float32)
    for k in range(K):
        # sel[src, t] = 1  iff  src == (t + k - 1) mod N   (handles N < 3 too)
        sel = jnp.roll(jnp.eye(N, dtype=jnp.float32), k - 1, axis=0)
        w4 = w4 + jnp.einsum('st,pd->sptd', sel, w_taps[k])
    return w4.reshape(N * P, N * D).astype(compute_dtype)


_BANDED_WEIGHT_BYTES_LIMIT = 2 * 1024 * 1024  # keep the resident weight small vs VMEM


@partial(jax.jit, static_argnums=(2, 3))
def _patch_embed_impl(x, conv_weight, patch_len, patch_stride):
    B, n_vars, L = x.shape
    P = patch_len
    D = conv_weight.shape[0]
    M = B * n_vars

    # nn.ReplicationPad1d((0, patch_stride)): replicate last sample on the right.
    pad = jnp.repeat(x[:, :, -1:], patch_stride, axis=-1)
    xp = jnp.concatenate([x, pad], axis=-1)              # [B, n_vars, L + stride]
    Lp = L + patch_stride

    # x.unfold(-1, size=P, step=P): with step == size the patches are simply the
    # first N*P samples of the padded series -> present a dense [M, N*P] slab,
    # no [M, N, P] re-materialization and no transposes around the kernel.
    N = (Lp - P) // P + 1
    x_series = xp[:, :, : N * P].reshape(M, N * P)

    compute_dtype = jnp.bfloat16
    out_dtype = x.dtype

    if (N * P) * (N * D) * jnp.dtype(compute_dtype).itemsize > _BANDED_WEIGHT_BYTES_LIMIT:
        # TODO(synk): for very large num_patches the banded weight no longer fits
        # comfortably in VMEM (and its ~N/3 zero-FLOP overhead could flip v5e
        # compute-bound); a per-tap K-fused Pallas kernel should replace this
        # plain-XLA fallback in that regime.
        patches = x_series.reshape(M, N, P)
        w = jnp.transpose(conv_weight, (2, 1, 0))         # [3, P, D]
        y = (jnp.roll(patches, 1, axis=1) @ w[0]
             + patches @ w[1]
             + jnp.roll(patches, -1, axis=1) @ w[2])
        return y.astype(out_dtype)

    # Cast to bf16 at the producing pad/concat fusion (no standalone convert
    # pass over HBM); accumulation inside the kernel stays f32.
    x_series = x_series.astype(compute_dtype)
    w_banded = _build_banded_weight(conv_weight, N, compute_dtype)
    return _circular_conv_banded_pallas(x_series, w_banded, out_dtype, N, D)


def patch_embedding_forward(x, conv_weight, patch_len, patch_stride):
    """x: [B, n_vars, L]; conv_weight: [d_model, patch_len, 3] (PyTorch layout).

    Returns ([B*n_vars, num_patches, d_model], n_vars), matching
    PatchEmbedding.forward (dropout is defined but never applied in forward).
    """
    return _patch_embed_impl(x, conv_weight, patch_len, patch_stride), x.shape[1]


def _reference(x, conv_weight, patch_len, patch_stride):
    """Pure-JAX f32 reference of the PyTorch forward (correctness check)."""
    B, n_vars, L = x.shape
    pad = jnp.repeat(x[:, :, -1:], patch_stride, axis=-1)
    xp = jnp.concatenate([x, pad], axis=-1)
    num_patches = (L + patch_stride - patch_len) // patch_len + 1
    patches = xp[:, :, : num_patches * patch_len].reshape(
        B * n_vars, num_patches, patch_len)
    w = jnp.transpose(conv_weight, (2, 1, 0))             # [3, P, D]
    x_prev = jnp.roll(patches, 1, axis=1)
    x_next = jnp.roll(patches, -1, axis=1)
    return x_prev @ w[0] + patches @ w[1] + x_next @ w[2], n_vars


if __name__ == "__main__":
    # Small shapes consistent with the module.
    B, n_vars, L = 2, 4, 16
    d_model, patch_len, patch_stride = 32, 4, 4

    key = jax.random.PRNGKey(0)
    kx, kw = jax.random.split(key)

    x = jax.random.normal(kx, (B, n_vars, L), dtype=jnp.float32)

    # Deterministic Kaiming-normal init (fan_in, leaky_relu) for the Conv1d
    # weight of TokenEmbedding: shape [d_model, patch_len, kernel=3].
    fan_in = patch_len * 3
    gain = math.sqrt(2.0 / (1.0 + 0.01 ** 2))
    std = gain / math.sqrt(fan_in)
    conv_weight = std * jax.random.normal(
        kw, (d_model, patch_len, 3), dtype=jnp.float32)

    out, nv = patch_embedding_forward(x, conv_weight, patch_len, patch_stride)
    out = jax.block_until_ready(out)

    ref, nv_ref = _reference(x, conv_weight, patch_len, patch_stride)
    assert nv == nv_ref
    assert out.shape == ref.shape, (out.shape, ref.shape)
    # bf16 inputs/weights with f32 accumulation vs f32 reference -> loose tolerance.
    assert jnp.allclose(out, ref, rtol=5e-2, atol=5e-2), "mismatch vs reference"

    print("KERNEL_OK")
</pallas_src>

<mosaic_0001>
module attributes {stable_mosaic.version = 11 : i64} {
  func.func @_banded_matmul_kernel(%arg0: i32, %arg1: memref<8x20xbf16, #tpu.memory_space<vmem>>, %arg2: memref<20x160xbf16, #tpu.memory_space<vmem>>, %arg3: memref<8x160xf32, #tpu.memory_space<vmem>>) attributes {dimension_semantics = [#tpu.dimension_semantics<parallel>], iteration_bounds = array<i64: 1>, scalar_prefetch = 0 : i64, scratch_operands = 0 : i64, tpu.core_type = #tpu.core_type<tc>, window_params = [{transform_indices = @transform_0, window_bounds = array<i64: 8, 20>}, {pipeline_mode = #tpu.pipeline_mode<synchronous>, transform_indices = @transform_1, window_bounds = array<i64: 20, 160>}, {transform_indices = @transform_2, window_bounds = array<i64: 8, 160>}]} {
    %c0 = arith.constant 0 : index
    %c0_0 = arith.constant 0 : index
    %0 = vector.load %arg1[%c0, %c0_0] : memref<8x20xbf16, #tpu.memory_space<vmem>>, vector<8x20xbf16>
    %c0_1 = arith.constant 0 : index
    %c0_2 = arith.constant 0 : index
    %1 = vector.load %arg2[%c0_1, %c0_2] : memref<20x160xbf16, #tpu.memory_space<vmem>>, vector<20x160xbf16>
    %cst = arith.constant dense<0.000000e+00> : vector<8x160xf32>
    %2 = tpu.matmul %0, %1, %cst {dimension_numbers = #tpu.dot_dimension_numbers<[1], [0], [0], [1], [0, 0, 1, 1], [], []>} : vector<8x20xbf16>, vector<20x160xbf16>, vector<8x160xf32> -> vector<8x160xf32>
    %c0_3 = arith.constant 0 : index
    %c0_4 = arith.constant 0 : index
    %3 = vector.load %arg3[%c0_3, %c0_4] : memref<8x160xf32, #tpu.memory_space<vmem>>, vector<8x160xf32>
    tpu.vector_store %arg3[%c0_3, %c0_4], %2 {strides = array<i32>} : memref<8x160xf32, #tpu.memory_space<vmem>>, vector<8x160xf32>,
    return
  }
  func.func @transform_0(%arg0: i32) -> (i32, i32) {
    %c0_i32 = arith.constant 0 : i32
    %c0_i32_0 = arith.constant 0 : i32
    return %arg0, %c0_i32 : i32, i32
  }
  func.func @transform_1(%arg0: i32) -> (i32, i32) {
    %c0_i32 = arith.constant 0 : i32
    %c0_i32_0 = arith.constant 0 : i32
    %c0_i32_1 = arith.constant 0 : i32
    return %c0_i32, %c0_i32_0 : i32, i32
  }
  func.func @transform_2(%arg0: i32) -> (i32, i32) {
    %c0_i32 = arith.constant 0 : i32
    %c0_i32_0 = arith.constant 0 : i32
    return %arg0, %c0_i32 : i32, i32
  }
}

</mosaic_0001>

<bundles_post_ra>
// kernel: _patch_embed_impl.1
= control target key start
LH: loop header
LB: loop body
LE: loop exit
PB: predicated region body
PF: predicated region fallthrough
CT: control target
= control target key end

     0   :  { %v102_v1 = vmov 0   ;;  %vm35_vm0 = vcmask 1041408   ;;  %vm31_vm1 = vcmask 162816   ;;  %vm84_vm2 = vcmask 261120   ;;  %s136_s1 = inlined_call_operand.vmem [shape: bf16[20,160], index: 1, kind: input, shape index: {}]   ;;  %s137_s0 = inlined_call_operand.vmem [shape: bf16[8,20], index: 0, kind: input, shape index: {}]   ;;  %s138_s2 = inlined_call_operand.vmem [shape: f32[8,160], index: 2, kind: output, shape index: {}]  }
   0x1   :  { %v15_v0 = vld [vmem:[%s136_s1 + $0x10] sm:$0x33]  ;;  %74 = vmatprep.mubr.bf16.mxu0 %v102_v1  ;;  %v97_v2 = vld [vmem:[%s136_s1 + $0x4] ss:$8 sps:$4 sm:$0xff]   ;;  %v100_v4 = vld [vmem:[%s136_s1] ss:$8 sps:$4 sm:$0xff]  }
   0x2   :  { %v93_v3 = vcombine.high %v15_v0, %v15_v0  ;;  %v92_v5 = vcombine.low %v15_v0, %v15_v0  ;;  %42 = vmatprep.subr.bf16.mxu0 %v97_v2  ;;  %v12_v7 = vld [vmem:[%s137_s0] sm:$0xf] }
   0x3   :  { %43 = vmatpush1.bf16.msra.mxu0 %v100_v4 }
   0x4   :  { %94 = vmatprep.subr.msk.bf16.mxu0 %vm35_vm0, %v93_v3  ;;  %v37_v6 = vsel %vm35_vm0, %v92_v5, 0 }
   0x7   :  { %45 = vmatpush1.bf16.msra.mxu0 %v37_v6 }
   0xa   :  { %95 = vmatmul.mubr.msk.bf16.vlgmr.msra.gmra.mrb[0].mxu0 %vm31_vm1, %v12_v7 }
  0xdd   :  { %v76_v8 = vpop.f32.mrb[0].mxu0 }
  0xde   :  { %83 = vst [vmem:[%s138_s2] sm:$0xff] %v76_v8  ;;  %v78_v9 = vpop.f32.mrb[1].mxu0 }
  0xdf   :  { %85 = vst.msk [vmem:[%s138_s2 + $0x8] sm:$0xff] %vm84_vm2, %v78_v9  ;;  %v80_v10 = vpop.f32.mrb[2].mxu0 }
  0xe0   :  { %v81_v11 = vpop.f32.mrb[3].mxu0 }

</bundles_post_ra>
